<compile_context>
chip_gen: v7x
topology: tpu7x:2x2x1
jax: 0.10.0
libtpu: 0.0.40
codegen_flags: <defaults>
</compile_context>

<pallas_src>
import functools

import jax
import jax.numpy as jnp
from jax.experimental import pallas as pl
from jax.experimental.pallas import tpu as pltpu


def _round_up(v, m):
    return ((v + m - 1) // m) * m


def _vmem_limit_bytes():
    # Generation-aware scoped-VMEM budget (v5e/v6e: 128 MiB physical, v7x: 64 MiB).
    try:
        cap = int(pltpu.get_tpu_info().vmem_capacity_bytes)
    except Exception:
        cap = 64 * 1024 * 1024
    return int(min(cap * 3 // 4, 100 * 1024 * 1024))


def _pick_tn(hp, kc, budget_bytes=20 * 1024 * 1024):
    """Largest multiple-of-128 divisor of hp (<= 512) whose double-buffered
    bf16 weight column slab (wx + wh) fits the VMEM budget."""
    best = 128
    cand = 128
    while cand <= min(hp, 512):
        if hp % cand == 0:
            w_slab = kc * 3 * cand * 2          # bf16 wx+wh columns for one tile
            if 2 * w_slab <= budget_bytes:      # double-buffered
                best = cand
        cand += 128
    return best


def _pick_tm(batch, candidates=(256, 128, 64, 32, 16, 8)):
    """Pick the batch tile that minimizes padded rows (ties -> larger tile)."""
    best_pad, best_c = None, None
    for c in candidates:          # descending, so ties keep the larger tile
        padded = _round_up(batch, c)
        if best_pad is None or padded < best_pad:
            best_pad, best_c = padded, c
    return best_c


# ----------------------------------------------------------------------------
# One-time parameter packing (NOT a per-call cost).
# ----------------------------------------------------------------------------
def pack_gru_params(w_ih, w_hh, b_ih, b_hh, *, compute_dtype=jnp.bfloat16):
    """Torch layout in: w_ih [3H, I], w_hh [3H, H], b_ih/b_hh [3H] (gate order r,z,n).

    Packed (gate-fused along the lane axis, interleaved per hidden-column tile):
      wx: [i_pad, nj*3*tn] bf16  columns of tile j = [W_ir_j | W_iz_j | W_in_j]
      wh: [hp,    nj*3*tn] bf16  columns of tile j = [W_hr_j | W_hz_j | W_hn_j]
      b : [2,     nj*3*tn] f32   row 0 = b_ih (same ordering), row 1 = b_hh
    """
    three_h, input_size = w_ih.shape
    hidden = w_hh.shape[1]
    assert three_h == 3 * hidden and w_hh.shape[0] == 3 * hidden

    hp = _round_up(hidden, 128)        # lane-aligned hidden width
    i_pad = _round_up(input_size, 128)
    kc = i_pad + hp
    tn = _pick_tn(hp, kc)
    nj = hp // tn

    def pack_w(w, k, k_pad):
        w3 = jnp.transpose(w.reshape(3, hidden, k), (2, 0, 1))          # [K, 3, H]
        w3 = jnp.pad(w3, ((0, k_pad - k), (0, 0), (0, hp - hidden)))    # [K_pad,3,hp]
        w3 = w3.reshape(k_pad, 3, nj, tn).transpose(0, 2, 1, 3)         # [K_pad,nj,3,tn]
        return w3.reshape(k_pad, nj * 3 * tn).astype(compute_dtype)

    def pack_b(b):
        b3 = jnp.pad(b.reshape(3, hidden), ((0, 0), (0, hp - hidden)))  # [3, hp]
        b3 = b3.reshape(3, nj, tn).transpose(1, 0, 2)                   # [nj, 3, tn]
        return b3.reshape(nj * 3 * tn).astype(jnp.float32)

    wx = pack_w(w_ih, input_size, i_pad)
    wh = pack_w(w_hh, hidden, hp)
    b = jnp.stack([pack_b(b_ih), pack_b(b_hh)], axis=0)                 # [2, nj*3*tn]

    return dict(wx=wx, wh=wh, b=b, input_size=input_size, hidden=hidden,
                i_pad=i_pad, hp=hp, tn=tn, nj=nj)


# ----------------------------------------------------------------------------
# Kernel: one grid step = full contraction for one (batch-tile, column-tile).
# ----------------------------------------------------------------------------
def _gru_kernel(x_ref, h_ref, wx_ref, wh_ref, b_ref, hb_ref, o_ref, *, tn):
    # One wide MXU matmul per operand (all 3 gates fused on the lane axis),
    # f32 accumulation; biases folded in with two broadcast adds.
    gx = jnp.dot(x_ref[...], wx_ref[...], preferred_element_type=jnp.float32)
    gh = jnp.dot(h_ref[...], wh_ref[...], preferred_element_type=jnp.float32)
    gx = gx + b_ref[0:1, :]
    gh = gh + b_ref[1:2, :]

    # Static, 128-aligned gate slices of the fused [tm, 3*tn] results.
    r = jax.nn.sigmoid(gx[:, 0:tn] + gh[:, 0:tn])
    z = jax.nn.sigmoid(gx[:, tn:2 * tn] + gh[:, tn:2 * tn])
    n = jnp.tanh(gx[:, 2 * tn:3 * tn] + r * gh[:, 2 * tn:3 * tn])

    h_prev = hb_ref[...].astype(jnp.float32)
    o_ref[...] = ((1.0 - z) * n + z * h_prev).astype(o_ref.dtype)


# ----------------------------------------------------------------------------
# Per-call wrapper
# ----------------------------------------------------------------------------
def gru_cell(x, h, params, *, tm=None):
    """x: [B, input_size]; h: [B, hidden]; params from pack_gru_params.
    Returns h': [B, hidden]."""
    batch, input_size = x.shape
    hidden = h.shape[-1]
    assert input_size == params["input_size"] and hidden == params["hidden"]

    i_pad, hp, tn, nj = params["i_pad"], params["hp"], params["tn"], params["nj"]
    compute_dtype = params["wx"].dtype

    if tm is None:
        tm = _pick_tm(batch)
    b_pad = _round_up(batch, tm)
    nb = b_pad // tm

    # Activation-sized pads only (cheap); no x/h concat materialized in HBM.
    x_p = jnp.pad(x.astype(compute_dtype),
                  ((0, b_pad - batch), (0, i_pad - input_size)))
    h_p = jnp.pad(h.astype(compute_dtype),
                  ((0, b_pad - batch), (0, hp - hidden)))
    h_blend = jnp.pad(h, ((0, b_pad - batch), (0, hp - hidden)))  # f32 blend input

    kernel = functools.partial(_gru_kernel, tn=tn)

    w_bytes = (params["wx"].size + params["wh"].size) * 2 + params["b"].size * 4
    cost = pl.CostEstimate(
        flops=2 * b_pad * (i_pad + hp) * 3 * hp,
        transcendentals=3 * b_pad * hp,
        bytes_accessed=int(w_bytes * (nb if nj > 1 else 1)
                           + x_p.size * 2 + h_p.size * 2
                           + h_blend.size * h_blend.dtype.itemsize
                           + b_pad * hp * x.dtype.itemsize),
    )

    # TODO(synk): on v7x (2 TensorCores) force nb*nj >= 2 (e.g. halve tn) so both
    # cores get a parallel block; left uniform here without reliable runtime
    # core-count detection.
    out = pl.pallas_call(
        kernel,
        out_shape=jax.ShapeDtypeStruct((b_pad, hp), x.dtype),
        grid_spec=pltpu.PrefetchScalarGridSpec(
            num_scalar_prefetch=0,
            grid=(nb, nj),
            in_specs=[
                pl.BlockSpec((tm, i_pad), lambda i, j: (i, 0)),      # x (contraction)
                pl.BlockSpec((tm, hp), lambda i, j: (i, 0)),         # h (contraction)
                pl.BlockSpec((i_pad, 3 * tn), lambda i, j: (0, j)),  # wx (gate-fused)
                pl.BlockSpec((hp, 3 * tn), lambda i, j: (0, j)),     # wh (gate-fused)
                pl.BlockSpec((2, 3 * tn), lambda i, j: (0, j)),      # biases
                pl.BlockSpec((tm, tn), lambda i, j: (i, j)),         # h (blend, f32)
            ],
            out_specs=pl.BlockSpec((tm, tn), lambda i, j: (i, j)),
        ),
        compiler_params=pltpu.CompilerParams(
            dimension_semantics=("parallel", "parallel"),
            vmem_limit_bytes=_vmem_limit_bytes(),
        ),
        cost_estimate=cost,
    )(x_p, h_p, params["wx"], params["wh"], params["b"], h_blend)

    return out[:batch, :hidden]


# ----------------------------------------------------------------------------
# Pure-JAX reference (f32) for correctness checking.
# ----------------------------------------------------------------------------
def _reference_gru(x, h, w_ih, w_hh, b_ih, b_hh):
    gx = x @ w_ih.T + b_ih
    gh = h @ w_hh.T + b_hh
    gx_r, gx_z, gx_n = jnp.split(gx, 3, axis=-1)
    gh_r, gh_z, gh_n = jnp.split(gh, 3, axis=-1)
    r = jax.nn.sigmoid(gx_r + gh_r)
    z = jax.nn.sigmoid(gx_z + gh_z)
    n = jnp.tanh(gx_n + r * gh_n)
    return (1.0 - z) * n + z * h


def _run_case(key, batch, input_size, hidden_size):
    ks = jax.random.split(key, 6)
    bound = 1.0 / (hidden_size ** 0.5)
    w_ih = jax.random.uniform(ks[0], (3 * hidden_size, input_size),
                              jnp.float32, -bound, bound)
    w_hh = jax.random.uniform(ks[1], (3 * hidden_size, hidden_size),
                              jnp.float32, -bound, bound)
    b_ih = jax.random.uniform(ks[2], (3 * hidden_size,), jnp.float32, -bound, bound)
    b_hh = jax.random.uniform(ks[3], (3 * hidden_size,), jnp.float32, -bound, bound)
    x = jax.random.normal(ks[4], (batch, input_size), jnp.float32)
    h = jax.random.normal(ks[5], (batch, hidden_size), jnp.float32)

    params = pack_gru_params(w_ih, w_hh, b_ih, b_hh)  # one-time packing
    h_new = gru_cell(x, h, params)
    jax.block_until_ready(h_new)

    h_ref = _reference_gru(x, h, w_ih, w_hh, b_ih, b_hh)
    assert h_new.shape == (batch, hidden_size)
    # bf16 MXU inputs, f32 accumulation -> loose-ish tolerance vs f32 reference.
    assert jnp.allclose(h_new, h_ref, atol=2e-2, rtol=2e-2), (
        "mismatch vs reference: max abs err "
        f"{float(jnp.max(jnp.abs(h_new - h_ref)))}")


if __name__ == "__main__":
    key = jax.random.PRNGKey(0)
    k1, k2, k3 = jax.random.split(key, 3)

    # Small demo shapes consistent with the module (batch, input_size, hidden).
    _run_case(k1, batch=4, input_size=64, hidden_size=32)     # nb=1, nj=1
    _run_case(k2, batch=20, input_size=70, hidden_size=300)   # hp=384 -> tn=384, nb>1
    _run_case(k3, batch=12, input_size=100, hidden_size=640)  # nj>1 (interleaved tiles)

    print("KERNEL_OK")
</pallas_src>

<mosaic_0001>
module attributes {stable_mosaic.version = 11 : i64} {
  func.func @_gru_kernel(%arg0: i32, %arg1: i32, %arg2: memref<8x128xbf16, #tpu.memory_space<vmem>>, %arg3: memref<8x128xbf16, #tpu.memory_space<vmem>>, %arg4: memref<128x384xbf16, #tpu.memory_space<vmem>>, %arg5: memref<128x384xbf16, #tpu.memory_space<vmem>>, %arg6: memref<2x384xf32, #tpu.memory_space<vmem>>, %arg7: memref<8x128xf32, #tpu.memory_space<vmem>>, %arg8: memref<8x128xf32, #tpu.memory_space<vmem>>) attributes {dimension_semantics = [#tpu.dimension_semantics<parallel>, #tpu.dimension_semantics<parallel>], iteration_bounds = array<i64: 1, 1>, scalar_prefetch = 0 : i64, scratch_operands = 0 : i64, tpu.core_type = #tpu.core_type<tc>, window_params = [{transform_indices = @transform_0, window_bounds = array<i64: 8, 128>}, {transform_indices = @transform_1, window_bounds = array<i64: 8, 128>}, {transform_indices = @transform_2, window_bounds = array<i64: 128, 384>}, {transform_indices = @transform_3, window_bounds = array<i64: 128, 384>}, {transform_indices = @transform_4, window_bounds = array<i64: 2, 384>}, {transform_indices = @transform_5, window_bounds = array<i64: 8, 128>}, {transform_indices = @transform_6, window_bounds = array<i64: 8, 128>}]} {
    %c0 = arith.constant 0 : index
    %c0_0 = arith.constant 0 : index
    %0 = vector.load %arg2[%c0, %c0_0] : memref<8x128xbf16, #tpu.memory_space<vmem>>, vector<8x128xbf16>
    %c0_1 = arith.constant 0 : index
    %c0_2 = arith.constant 0 : index
    %1 = vector.load %arg4[%c0_1, %c0_2] : memref<128x384xbf16, #tpu.memory_space<vmem>>, vector<128x384xbf16>
    %cst = arith.constant dense<0.000000e+00> : vector<8x384xf32>
    %2 = tpu.matmul %0, %1, %cst {dimension_numbers = #tpu.dot_dimension_numbers<[1], [0], [0], [1], [0, 0, 1, 1], [], []>} : vector<8x128xbf16>, vector<128x384xbf16>, vector<8x384xf32> -> vector<8x384xf32>
    %c0_3 = arith.constant 0 : index
    %c0_4 = arith.constant 0 : index
    %3 = vector.load %arg3[%c0_3, %c0_4] : memref<8x128xbf16, #tpu.memory_space<vmem>>, vector<8x128xbf16>
    %c0_5 = arith.constant 0 : index
    %c0_6 = arith.constant 0 : index
    %4 = vector.load %arg5[%c0_5, %c0_6] : memref<128x384xbf16, #tpu.memory_space<vmem>>, vector<128x384xbf16>
    %cst_7 = arith.constant dense<0.000000e+00> : vector<8x384xf32>
    %5 = tpu.matmul %3, %4, %cst_7 {dimension_numbers = #tpu.dot_dimension_numbers<[1], [0], [0], [1], [0, 0, 1, 1], [], []>} : vector<8x128xbf16>, vector<128x384xbf16>, vector<8x384xf32> -> vector<8x384xf32>
    %c0_8 = arith.constant 0 : index
    %c0_9 = arith.constant 0 : index
    %6 = vector.load %arg6[%c0_8, %c0_9] : memref<2x384xf32, #tpu.memory_space<vmem>>, vector<1x384xf32>
    %7 = vector.broadcast %6 : vector<1x384xf32> to vector<8x384xf32>
    %8 = arith.addf %2, %7 : vector<8x384xf32>
    %c1 = arith.constant 1 : index
    %c0_10 = arith.constant 0 : index
    %9 = vector.load %arg6[%c1, %c0_10] : memref<2x384xf32, #tpu.memory_space<vmem>>, vector<1x384xf32>
    %10 = vector.broadcast %9 : vector<1x384xf32> to vector<8x384xf32>
    %11 = arith.addf %5, %10 : vector<8x384xf32>
    %12 = vector.extract_strided_slice %8 {offsets = [0, 0], sizes = [8, 128], strides = [1, 1]} : vector<8x384xf32> to vector<8x128xf32>
    %13 = vector.extract_strided_slice %11 {offsets = [0, 0], sizes = [8, 128], strides = [1, 1]} : vector<8x384xf32> to vector<8x128xf32>
    %14 = arith.addf %12, %13 : vector<8x128xf32>
    %15 = arith.negf %14 : vector<8x128xf32>
    %16 = math.exp %15 : vector<8x128xf32>
    %cst_11 = arith.constant 1.000000e+00 : f32
    %17 = vector.broadcast %cst_11 : f32 to vector<8x128xf32>
    %18 = arith.addf %17, %16 : vector<8x128xf32>
    %19 = arith.divf %17, %18 : vector<8x128xf32>
    %20 = vector.extract_strided_slice %8 {offsets = [0, 128], sizes = [8, 128], strides = [1, 1]} : vector<8x384xf32> to vector<8x128xf32>
    %21 = vector.extract_strided_slice %11 {offsets = [0, 128], sizes = [8, 128], strides = [1, 1]} : vector<8x384xf32> to vector<8x128xf32>
    %22 = arith.addf %20, %21 : vector<8x128xf32>
    %23 = arith.negf %22 : vector<8x128xf32>
    %24 = math.exp %23 : vector<8x128xf32>
    %cst_12 = arith.constant 1.000000e+00 : f32
    %25 = vector.broadcast %cst_12 : f32 to vector<8x128xf32>
    %26 = arith.addf %25, %24 : vector<8x128xf32>
    %27 = arith.divf %25, %26 : vector<8x128xf32>
    %28 = vector.extract_strided_slice %8 {offsets = [0, 256], sizes = [8, 128], strides = [1, 1]} : vector<8x384xf32> to vector<8x128xf32>
    %29 = vector.extract_strided_slice %11 {offsets = [0, 256], sizes = [8, 128], strides = [1, 1]} : vector<8x384xf32> to vector<8x128xf32>
    %30 = arith.mulf %19, %29 : vector<8x128xf32>
    %31 = arith.addf %28, %30 : vector<8x128xf32>
    %32 = math.tanh %31 : vector<8x128xf32>
    %c0_13 = arith.constant 0 : index
    %c0_14 = arith.constant 0 : index
    %33 = vector.load %arg7[%c0_13, %c0_14] : memref<8x128xf32, #tpu.memory_space<vmem>>, vector<8x128xf32>
    %cst_15 = arith.constant 1.000000e+00 : f32
    %34 = vector.broadcast %cst_15 : f32 to vector<8x128xf32>
    %35 = arith.subf %34, %27 : vector<8x128xf32>
    %36 = arith.mulf %35, %32 : vector<8x128xf32>
    %37 = arith.mulf %27, %33 : vector<8x128xf32>
    %38 = arith.addf %36, %37 : vector<8x128xf32>
    %c0_16 = arith.constant 0 : index
    %c0_17 = arith.constant 0 : index
    %39 = vector.load %arg8[%c0_16, %c0_17] : memref<8x128xf32, #tpu.memory_space<vmem>>, vector<8x128xf32>
    tpu.vector_store %arg8[%c0_16, %c0_17], %38 {strides = array<i32>} : memref<8x128xf32, #tpu.memory_space<vmem>>, vector<8x128xf32>,
    return
  }
  func.func @transform_0(%arg0: i32, %arg1: i32) -> (i32, i32) {
    %c0_i32 = arith.constant 0 : i32
    %c0_i32_0 = arith.constant 0 : i32
    return %arg0, %c0_i32 : i32, i32
  }
  func.func @transform_1(%arg0: i32, %arg1: i32) -> (i32, i32) {
    %c0_i32 = arith.constant 0 : i32
    %c0_i32_0 = arith.constant 0 : i32
    return %arg0, %c0_i32 : i32, i32
  }
  func.func @transform_2(%arg0: i32, %arg1: i32) -> (i32, i32) {
    %c0_i32 = arith.constant 0 : i32
    %c0_i32_0 = arith.constant 0 : i32
    return %c0_i32, %arg1 : i32, i32
  }
  func.func @transform_3(%arg0: i32, %arg1: i32) -> (i32, i32) {
    %c0_i32 = arith.constant 0 : i32
    %c0_i32_0 = arith.constant 0 : i32
    return %c0_i32, %arg1 : i32, i32
  }
  func.func @transform_4(%arg0: i32, %arg1: i32) -> (i32, i32) {
    %c0_i32 = arith.constant 0 : i32
    %c0_i32_0 = arith.constant 0 : i32
    return %c0_i32, %arg1 : i32, i32
  }
  func.func @transform_5(%arg0: i32, %arg1: i32) -> (i32, i32) {
    %c0_i32 = arith.constant 0 : i32
    return %arg0, %arg1 : i32, i32
  }
  func.func @transform_6(%arg0: i32, %arg1: i32) -> (i32, i32) {
    %c0_i32 = arith.constant 0 : i32
    return %arg0, %arg1 : i32, i32
  }
}

</mosaic_0001>

<bundles_post_ra>
// kernel: tpu_custom_call.1
= control target key start
LH: loop header
LB: loop body
LE: loop exit
PB: predicated region body
PF: predicated region fallthrough
CT: control target
= control target key end

     0   :  { %11 = vsyncpa [#allocation3], 0  ;;  %s1090_s0 = inlined_call_operand.hbm [shape: bf16[8,128], index: 0, kind: input, shape index: {}]   ;;  %s1091_s1 = inlined_call_operand.hbm [shape: bf16[8,128], index: 1, kind: input, shape index: {}]   ;;  %s1092_s2 = inlined_call_operand.hbm [shape: bf16[128,384], index: 2, kind: input, shape index: {}]   ;;  %s1093_s3 = inlined_call_operand.hbm [shape: bf16[128,384], index: 3, kind: input, shape index: {}]   ;;  %s1094_s4 = inlined_call_operand.vmem [shape: f32[2,384], index: 4, kind: input, shape index: {}]   ;;  %s1095_s5 = inlined_call_operand.vmem [shape: f32[8,128], index: 5, kind: input, shape index: {}]   ;;  %s1096_s6 = inlined_call_operand.hbm [shape: f32[8,128], index: 6, kind: output, shape index: {}]  }
   0x1   :  { %12 = vsyncpa [#allocation6], 0 }
   0x2   :  { %13 = vsyncpa [#allocation9], 0 }
   0x3   :  { %14 = vsyncpa [#allocation4], 0  ;;  %s954_s21 = smov [#allocation5]   ;;  %s955_s23 = smov [#allocation2]  }
   0x4   :  { %s31_s22 = sshll.u32 %s954_s21, 4  ;;  %s21_s24 = sshll.u32 %s955_s23, 4  ;;  %s32_s22 = int_to_ptr.vmem [resolvable:$true] %s31_s22  ;;  %s22_s24 = int_to_ptr.vmem [resolvable:$true] %s21_s24 }
   0x5   :  { %s836_s27 = scalar_lea.hbm %s1091_s1, 64 }
   0x6   :  { %p837_p0 = scmp.ne.s32.totalorder %s1091_s1, %s836_s27  ;;  %p840_p1 = scmp.lt.u32.totalorder %s836_s27, %s1091_s1 }
   0x8   :  { %p842_p2 = pnand %p840_p1, %p837_p0 }
   0xa   :  { %845 = shalt.err (!%p842_p2)
}
   0xb   :  { %s846_s8 = scalar_lea.vmem %s32_s22, 64  ;;  %p851_p4 = scmp.lt.s32.totalorder %s32_s22, %s32_s22 }
   0xc   :  { %p847_p3 = scmp.ne.s32.totalorder %s32_s22, %s846_s8  ;;  %p852_p5 = scmp.lt.s32.totalorder %s846_s8, %s846_s8 }
   0xe   :  { %p853_p6 = por %p852_p5, %p851_p4 }
  0x10   :  { %p854_p7 = pnand %p853_p6, %p847_p3 }
  0x12   :  { %857 = shalt.err (!%p854_p7)
}
  0x13   :  { %34 = dma.hbm_to_vmem [thread:$0]  %s1091_s1, 64, %s32_s22, [#allocation6]  }
  0x14   :  { %s858_s13 = scalar_lea.hbm %s1090_s0, 64 }
  0x15   :  { %p859_p8 = scmp.ne.s32.totalorder %s1090_s0, %s858_s13  ;;  %p862_p9 = scmp.lt.u32.totalorder %s858_s13, %s1090_s0 }
  0x17   :  { %p864_p10 = pnand %p862_p9, %p859_p8 }
  0x19   :  { %867 = shalt.err (!%p864_p10)
}
  0x1a   :  { %s868_s18 = scalar_lea.vmem %s22_s24, 64  ;;  %p873_p12 = scmp.lt.s32.totalorder %s22_s24, %s22_s24 }
  0x1b   :  { %p869_p11 = scmp.ne.s32.totalorder %s22_s24, %s868_s18  ;;  %p874_p13 = scmp.lt.s32.totalorder %s868_s18, %s868_s18 }
  0x1d   :  { %p875_p0 = por %p874_p13, %p873_p12 }
  0x1f   :  { %p876_p1 = pnand %p875_p0, %p869_p11 }
  0x21   :  { %879 = shalt.err (!%p876_p1)
}
  0x22   :  { %24 = dma.hbm_to_vmem [thread:$0]  %s1090_s0, 64, %s22_s24, [#allocation3]  }
  0x23   :  { %s956_s20 = smov [#allocation7]   ;;  %s880_s25 = scalar_lea.hbm %s1092_s2, 3072 }
  0x24   :  { %s40_s21 = sshll.u32 %s956_s20, 4  ;;  %p881_p2 = scmp.ne.s32.totalorder %s1092_s2, %s880_s25  ;;  %s41_s21 = int_to_ptr.vmem [resolvable:$true] %s40_s21 }
  0x25   :  { %p884_p3 = scmp.lt.u32.totalorder %s880_s25, %s1092_s2 }
  0x27   :  { %p886_p4 = pnand %p884_p3, %p881_p2 }
  0x29   :  { %889 = shalt.err (!%p886_p4)
}
  0x2a   :  { %s890_s30 = scalar_lea.vmem %s41_s21, 3072  ;;  %p895_p6 = scmp.lt.s32.totalorder %s41_s21, %s41_s21 }
  0x2b   :  { %p891_p5 = scmp.ne.s32.totalorder %s41_s21, %s890_s30  ;;  %p896_p7 = scmp.lt.s32.totalorder %s890_s30, %s890_s30 }
  0x2d   :  { %p897_p8 = por %p896_p7, %p895_p6 }
  0x2f   :  { %p898_p9 = pnand %p897_p8, %p891_p5 }
  0x31   :  { %901 = shalt.err (!%p898_p9)
}
  0x32   :  { %s957_s0 = smov 192   ;;  %s958_s24 = smov 12  }
  0x33   :  { %46 = dma.hbm_to_vmem [thread:$0]  %s1092_s2, 3072, %s41_s21, [#allocation6], %s957_s0, %s957_s0, %s958_s24  }
  0x34   :  { %s959_s9 = smov [#allocation8]   ;;  %s902_s13 = scalar_lea.hbm %s1093_s3, 3072 }
  0x35   :  { %s52_s10 = sshll.u32 %s959_s9, 4  ;;  %p903_p10 = scmp.ne.s32.totalorder %s1093_s3, %s902_s13  ;;  %s53_s10 = int_to_ptr.vmem [resolvable:$true] %s52_s10 }
  0x36   :  { %p906_p11 = scmp.lt.u32.totalorder %s902_s13, %s1093_s3 }
  0x38   :  { %p908_p12 = pnand %p906_p11, %p903_p10 }
  0x3a   :  { %911 = shalt.err (!%p908_p12)
}
  0x3b   :  { %s912_s18 = scalar_lea.vmem %s53_s10, 3072  ;;  %p917_p0 = scmp.lt.s32.totalorder %s53_s10, %s53_s10 }
  0x3c   :  { %p913_p13 = scmp.ne.s32.totalorder %s53_s10, %s912_s18  ;;  %p918_p1 = scmp.lt.s32.totalorder %s912_s18, %s912_s18 }
  0x3e   :  { %p919_p2 = por %p918_p1, %p917_p0 }
  0x40   :  { %p920_p3 = pnand %p919_p2, %p913_p13 }
  0x42   :  { %923 = shalt.err (!%p920_p3)
}
  0x43   :  { %58 = dma.hbm_to_vmem [thread:$0]  %s1093_s3, 3072, %s53_s10, [#allocation9], %s957_s0, %s957_s0, %s958_s24  }
  0x44   :  { %946 = dma.done.wait [#allocation3], 64  }
  0x45   :  { %947 = vsyncadd [#allocation3], 4294967232 }
  0x46   :  { %948 = dma.done.wait [#allocation6], 3136  }
  0x47   :  { %949 = vsyncadd [#allocation6], 4294964160 }
  0x48   :  { %950 = dma.done.wait [#allocation9], 3072  }
  0x49   :  { %951 = vsyncadd [#allocation9], 4294964224  ;;  %v960_v0 = vmov 0.0   ;;  %v961_v1 = vmov 0   ;;  %vm962_vm0 = vmmov 0   ;;  %v144_v56 = vlaneseq  ;;  %s963_s23 = smov [#allocation10]  }
  0x4a   :  { %704 = vmatprep.subr.bf16.mxu1 %v960_v0  ;;  %319 = vmatprep.mubr.bf16.mxu0 %v961_v1  ;;  %v762_v2 = vld [vmem:[#allocation7 + $0x4] ss:$12 sps:$4 sm:$0xff]   ;;  %v764_v3 = vld [vmem:[#allocation7] ss:$12 sps:$4 sm:$0xff]   ;;  %v765_v4 = vld [vmem:[#allocation7 + $0x1c] ss:$12 sps:$4 sm:$0xff]  }
  0x4b   :  { %720 = vmatprep.mubr.msk.bf16.mxu1 %vm962_vm0, %v960_v0  ;;  %287 = vmatprep.subr.bf16.mxu0 %v762_v2  ;;  %v767_v5 = vld [vmem:[#allocation7 + $0x18] ss:$12 sps:$4 sm:$0xff]   ;;  %v768_v6 = vld [vmem:[#allocation7 + $0x34] ss:$12 sps:$4 sm:$0xff]   ;;  %v770_v7 = vld [vmem:[#allocation7 + $0x30] ss:$12 sps:$4 sm:$0xff]  }
  0x4c   :  { %288 = vmatpush1.bf16.msra.mxu0 %v764_v3  ;;  %v771_v8 = vld [vmem:[#allocation7 + $0x4c] ss:$12 sps:$4 sm:$0xff]   ;;  %v782_v9 = vld [vmem:[#allocation7 + $0x8] ss:$12 sps:$4 sm:$0xff]   ;;  %v774_v11 = vld [vmem:[#allocation7 + $0x64] ss:$12 sps:$4 sm:$0xff]  }
  0x4d   :  { %289 = vmatprep.subr.bf16.mxu0 %v765_v4  ;;  %v773_v10 = vld [vmem:[#allocation7 + $0x48] ss:$12 sps:$4 sm:$0xff]   ;;  %705 = vmatpush3.bf16.msra.mxu1 %v782_v9  ;;  %v786_v12 = vld [vmem:[#allocation7 + $0x20] ss:$12 sps:$4 sm:$0xff]   ;;  %v788_v14 = vld [vmem:[#allocation7 + $0x38] ss:$12 sps:$4 sm:$0xff]  }
  0x4e   :  { %706 = vmatprep.subr.bf16.mxu1 %v960_v0  ;;  %v776_v13 = vld [vmem:[#allocation7 + $0x60] ss:$12 sps:$4 sm:$0xff]   ;;  %v777_v15 = vld [vmem:[#allocation7 + $0x7c] ss:$12 sps:$4 sm:$0xff]   ;;  %v779_v16 = vld [vmem:[#allocation7 + $0x78] ss:$12 sps:$4 sm:$0xff]  }
  0x4f   :  { %v792_v17 = vld [vmem:[#allocation7 + $0x50] ss:$12 sps:$4 sm:$0xff]   ;;  %v780_v18 = vld [vmem:[#allocation7 + $0x94] ss:$12 sps:$4 sm:$0xff]   ;;  %v784_v21 = vld [vmem:[#allocation7 + $0xac] ss:$12 sps:$4 sm:$0xff]  }
  0x50   :  { %290 = vmatpush1.bf16.msra.mxu0 %v767_v5  ;;  %v783_v19 = vld [vmem:[#allocation7 + $0x90] ss:$12 sps:$4 sm:$0xff]   ;;  %v796_v20 = vld [vmem:[#allocation7 + $0x68] ss:$12 sps:$4 sm:$0xff]   ;;  %v800_v23 = vld [vmem:[#allocation7 + $0x80] ss:$12 sps:$4 sm:$0xff]  }
  0x51   :  { %291 = vmatprep.subr.bf16.mxu0 %v768_v6  ;;  %707 = vmatpush3.bf16.msra.mxu1 %v786_v12  ;;  %v787_v22 = vld [vmem:[#allocation7 + $0xa8] ss:$12 sps:$4 sm:$0xff]   ;;  %v791_v24 = vld [vmem:[#allocation8 + $0x4] ss:$12 sps:$4 sm:$0xff]   ;;  %v789_v25 = vld [vmem:[#allocation8] ss:$12 sps:$4 sm:$0xff]  }
  0x52   :  { %708 = vmatprep.subr.bf16.mxu1 %v960_v0  ;;  %v76_v26 = vld [vmem:[#allocation2] sm:$0xf]  ;;  %v795_v28 = vld [vmem:[#allocation8 + $0x1c] ss:$12 sps:$4 sm:$0xff]   ;;  %v799_v31 = vld [vmem:[#allocation8 + $0x34] ss:$12 sps:$4 sm:$0xff]  }
  0x53   :  { %v804_v27 = vld [vmem:[#allocation7 + $0x98] ss:$12 sps:$4 sm:$0xff]   ;;  %v808_v30 = vld [vmem:[#allocation7 + $0xb0] ss:$12 sps:$4 sm:$0xff]   ;;  %v815_v33 = vld [vmem:[#allocation8 + $0x8] ss:$12 sps:$4 sm:$0xff]  }
  0x54   :  { %292 = vmatpush1.bf16.msra.mxu0 %v770_v7  ;;  %v793_v29 = vld [vmem:[#allocation8 + $0x18] ss:$12 sps:$4 sm:$0xff]   ;;  %v797_v32 = vld [vmem:[#allocation8 + $0x30] ss:$12 sps:$4 sm:$0xff]   ;;  %v801_v35 = vld [vmem:[#allocation8 + $0x48] ss:$12 sps:$4 sm:$0xff]  }
  0x55   :  { %293 = vmatprep.subr.bf16.mxu0 %v771_v8  ;;  %709 = vmatpush3.bf16.msra.mxu1 %v788_v14  ;;  %v803_v34 = vld [vmem:[#allocation8 + $0x4c] ss:$12 sps:$4 sm:$0xff]   ;;  %v807_v37 = vld [vmem:[#allocation8 + $0x64] ss:$12 sps:$4 sm:$0xff]   ;;  %v811_v40 = vld [vmem:[#allocation8 + $0x7c] ss:$12 sps:$4 sm:$0xff]  }
  0x56   :  { %710 = vmatprep.subr.bf16.mxu1 %v960_v0  ;;  %v819_v36 = vld [vmem:[#allocation8 + $0x20] ss:$12 sps:$4 sm:$0xff]   ;;  %v820_v39 = vld [vmem:[#allocation8 + $0x38] ss:$12 sps:$4 sm:$0xff]   ;;  %v821_v42 = vld [vmem:[#allocation8 + $0x50] ss:$12 sps:$4 sm:$0xff]  }
  0x57   :  { %v805_v38 = vld [vmem:[#allocation8 + $0x60] ss:$12 sps:$4 sm:$0xff]   ;;  %v809_v41 = vld [vmem:[#allocation8 + $0x78] ss:$12 sps:$4 sm:$0xff]   ;;  %v812_v44 = vld [vmem:[#allocation8 + $0x90] ss:$12 sps:$4 sm:$0xff]  }
  0x58   :  { %294 = vmatpush1.bf16.msra.mxu0 %v773_v10  ;;  %v814_v43 = vld [vmem:[#allocation8 + $0x94] ss:$12 sps:$4 sm:$0xff]   ;;  %v818_v46 = vld [vmem:[#allocation8 + $0xac] ss:$12 sps:$4 sm:$0xff]   ;;  %v109_v49 = vld [vmem:[#allocation5] sm:$0xf] }
  0x59   :  { %295 = vmatprep.subr.bf16.mxu0 %v774_v11  ;;  %711 = vmatpush3.bf16.msra.mxu1 %v792_v17  ;;  %v822_v45 = vld [vmem:[#allocation8 + $0x68] ss:$12 sps:$4 sm:$0xff]   ;;  %v823_v48 = vld [vmem:[#allocation8 + $0x80] ss:$12 sps:$4 sm:$0xff]   ;;  %v824_v50 = vld [vmem:[#allocation8 + $0x98] ss:$12 sps:$4 sm:$0xff]  }
  0x5a   :  { %712 = vmatprep.subr.bf16.mxu1 %v960_v0  ;;  %v816_v47 = vld [vmem:[#allocation8 + $0xa8] ss:$12 sps:$4 sm:$0xff]   ;;  %v825_v51 = vld [vmem:[#allocation8 + $0xb0] ss:$12 sps:$4 sm:$0xff]   ;;  %v145_v57 = vshrl.u32 %v144_v56, 7  ;;  %s624_s25 = sshll.u32 %s963_s23, 4  ;;  %s625_s25 = int_to_ptr.vmem [resolvable:$true] %s624_s25 }
  0x5b   :  { %v659_v59 = vld [vmem:[%s1094_s4 + $0x1] ss:$2 sm:$0x7]  ;;  %v142_v60 = vld [vmem:[%s1094_s4] ss:$2 sm:$0x7]  ;;  %p929_p5 = scmp.lt.s32.totalorder %s625_s25, %s625_s25 }
  0x5c   :  { %296 = vmatpush1.bf16.msra.mxu0 %v776_v13  ;;  %v146_v58 = vsub.s32 0, %v145_v57  ;;  %v150_v61 = vsub.s32 1, %v145_v57  ;;  %s924_s26 = scalar_lea.vmem %s625_s25, 128 }
  0x5d   :  { %297 = vmatprep.subr.bf16.mxu0 %v777_v15  ;;  %713 = vmatpush3.bf16.msra.mxu1 %v796_v20  ;;  %p925_p4 = scmp.ne.s32.totalorder %s625_s25, %s924_s26  ;;  %p930_p6 = scmp.lt.s32.totalorder %s924_s26, %s924_s26 }
  0x5e   :  { %714 = vmatprep.subr.bf16.mxu1 %v960_v0  ;;  %v147_v62 = vrot.slane %v142_v60, %v146_v58  ;;  %v374_v63 = vrot.slane %v659_v59, %v146_v58 }
  0x5f   :  { %p931_p7 = por %p930_p6, %p929_p5 }
  0x60   :  { %298 = vmatpush1.bf16.msra.mxu0 %v779_v16  ;;  %v744_v2 = vadd.f32 %v374_v63, %v147_v62 }
  0x61   :  { %299 = vmatprep.subr.bf16.mxu0 %v780_v18  ;;  %715 = vmatpush3.bf16.msra.mxu1 %v800_v23  ;;  %v154_v18 = vsub.s32 2, %v145_v57  ;;  %p932_p8 = pnand %p931_p7, %p925_p4 }
  0x62   :  { %716 = vmatprep.subr.bf16.mxu1 %v960_v0 }
  0x64   :  { %300 = vmatpush1.bf16.msra.mxu0 %v783_v19  ;;  %v382_v19 = vrot.slane %v659_v59, %v154_v18 }
  0x65   :  { %301 = vmatprep.subr.bf16.mxu0 %v784_v21  ;;  %717 = vmatpush3.bf16.msra.mxu1 %v804_v27  ;;  %v155_v21 = vrot.slane %v142_v60, %v154_v18 }
  0x66   :  { %718 = vmatprep.subr.bf16.mxu1 %v960_v0 }
  0x68   :  { %302 = vmatpush1.bf16.msra.mxu0 %v787_v22 }
  0x69   :  { %514 = vmatprep.subr.bf16.mxu0 %v791_v24  ;;  %719 = vmatpush3.bf16.msra.mxu1 %v808_v30 }
  0x6a   :  { %724 = vmatprep.subr.bf16.mxu1 %v960_v0 }
  0x6b   :  { %320 = vmatmul.mubr.bf16.vlgmr.msra.gmra.mrb[0].mxu0 %v76_v26 }
  0x6c   :  { %515 = vmatpush1.bf16.msra.mxu0 %v789_v25  ;;  %546 = vmatprep.mubr.bf16.mxu0 %v961_v1  ;;  %v378_v1 = vrot.slane %v659_v59, %v150_v61 }
  0x6d   :  { %516 = vmatprep.subr.bf16.mxu0 %v795_v28  ;;  %721 = vmatmul.mubr.bf16.vlgmr.msra.gmra.mrb[0].mxu1 %v76_v26 }
  0x6e   :  { %725 = vmatpush3.bf16.msra.mxu1 %v815_v33  ;;  %740 = vmatprep.mubr.msk.bf16.mxu1 %vm962_vm0, %v960_v0 }
  0x6f   :  { %726 = vmatprep.subr.bf16.mxu1 %v960_v0 }
  0x70   :  { %517 = vmatpush1.bf16.msra.mxu0 %v793_v29  ;;  %v612_v29 = vld [vmem:[%s1095_s5] sm:$0xff] }
  0x71   :  { %518 = vmatprep.subr.bf16.mxu0 %v799_v31 }
  0x72   :  { %727 = vmatpush3.bf16.msra.mxu1 %v819_v36 }
  0x73   :  { %728 = vmatprep.subr.bf16.mxu1 %v960_v0 }
  0x74   :  { %519 = vmatpush1.bf16.msra.mxu0 %v797_v32 }
  0x75   :  { %520 = vmatprep.subr.bf16.mxu0 %v803_v34 }
  0x76   :  { %729 = vmatpush3.bf16.msra.mxu1 %v820_v39 }
  0x77   :  { %730 = vmatprep.subr.bf16.mxu1 %v960_v0 }
  0x78   :  { %521 = vmatpush1.bf16.msra.mxu0 %v801_v35 }
  0x79   :  { %522 = vmatprep.subr.bf16.mxu0 %v807_v37 }
  0x7a   :  { %731 = vmatpush3.bf16.msra.mxu1 %v821_v42 }
  0x7b   :  { %732 = vmatprep.subr.bf16.mxu1 %v960_v0 }
  0x7c   :  { %523 = vmatpush1.bf16.msra.mxu0 %v805_v38 }
  0x7d   :  { %524 = vmatprep.subr.bf16.mxu0 %v811_v40 }
  0x7e   :  { %733 = vmatpush3.bf16.msra.mxu1 %v822_v45 }
  0x7f   :  { %734 = vmatprep.subr.bf16.mxu1 %v960_v0 }
  0x80   :  { %525 = vmatpush1.bf16.msra.mxu0 %v809_v41 }
  0x81   :  { %526 = vmatprep.subr.bf16.mxu0 %v814_v43 }
  0x82   :  { %735 = vmatpush3.bf16.msra.mxu1 %v823_v48 }
  0x83   :  { %736 = vmatprep.subr.bf16.mxu1 %v960_v0 }
  0x84   :  { %527 = vmatpush1.bf16.msra.mxu0 %v812_v44 }
  0x85   :  { %528 = vmatprep.subr.bf16.mxu0 %v818_v46 }
  0x86   :  { %737 = vmatpush3.bf16.msra.mxu1 %v824_v50 }
  0x87   :  { %738 = vmatprep.subr.bf16.mxu1 %v960_v0  ;;  %v151_v0 = vrot.slane %v142_v60, %v150_v61 }
  0x88   :  { %529 = vmatpush1.bf16.msra.mxu0 %v816_v47 }
  0x89   :  { %v746_v4 = vadd.f32 %v378_v1, %v151_v0 }
  0x8a   :  { %739 = vmatpush3.bf16.msra.mxu1 %v825_v51 }
  0x8b   :  { %547 = vmatmul.mubr.bf16.vlgmr.msra.gmra.mrb[0].mxu0 %v109_v49 }
  0x8d   :  { %741 = vmatmul.mubr.bf16.vlgmr.msra.gmra.mrb[4].mxu1 %v109_v49 }
 0x140   :  { %v362_v52 = vpop.f32.mrb[0].mxu1 }
 0x141   :  { %v722_v53 = vpop.f32.mrb[1].mxu1  ;;  %v363_v25 = vadd.f32 %v362_v52, %v155_v21 }
 0x142   :  { %v365_v54 = vpop.f32.mrb[2].mxu1 }
 0x143   :  { %v723_v55 = vpop.f32.mrb[3].mxu1 }
 0x15e   :  { %v548_v3 = vpop.f32.mrb[0].mxu0 }
 0x15f   :  { %v745_v5 = vadd.f32 %v744_v2, %v548_v3  ;;  %v550_v6 = vpop.f32.mrb[1].mxu0 }
 0x160   :  { %v552_v7 = vpop.f32.mrb[2].mxu0  ;;  %v747_v10 = vadd.f32 %v746_v4, %v550_v6  ;;  %v589_v12 = vpop.f32.mrb[4].mxu1 }
 0x161   :  { %v684_v8 = vmul.f32 -1.442695, %v745_v5  ;;  %v553_v9 = vpop.f32.mrb[3].mxu0  ;;  %v742_v13 = vpop.f32.mrb[5].mxu1  ;;  %v590_v23 = vadd.f32 %v589_v12, %v382_v19 }
 0x162   :  { %v685_v11 = vmul.f32 -1.442695, %v747_v10  ;;  %v592_v14 = vpop.f32.mrb[6].mxu1 }
 0x163   :  { %826 = vpow2.f32 %v684_v8  ;;  %v743_v15 = vpop.f32.mrb[7].mxu1 }
 0x164   :  { %828 = vpow2.f32 %v685_v11 }
 0x16d   :  { %v827_v16 = vpop.eup %826 }
 0x16e   :  { %v599_v17 = vadd.f32 1.0, %v827_v16  ;;  %v829_v20 = vpop.eup %828 }
 0x16f   :  { %v606_v22 = vadd.f32 1.0, %v829_v20 }
 0x170   :  { %830 = vrcp.f32 %v599_v17 }
 0x171   :  { %832 = vrcp.f32 %v606_v22 }
 0x17a   :  { %v831_v24 = vpop.eup %830 }
 0x17b   :  { %v609_v26 = vmul.f32 %v831_v24, %v590_v23  ;;  %v833_v28 = vpop.eup %832 }
 0x17c   :  { %v613_v30 = vsub.f32 1.0, %v833_v28  ;;  %v615_v33 = vmul.f32 %v833_v28, %v612_v29 }
 0x17d   :  { %v610_v27 = vadd.f32 %v609_v26, %v363_v25 }
 0x17f   :  { %834 = vtanh.f32 %v610_v27 }
 0x189   :  { %v835_v31 = vpop.eup %834 }
 0x18a   :  { %v614_v32 = vmul.f32 %v835_v31, %v613_v30 }
 0x18c   :  { %v616_v34 = vadd.f32 %v615_v33, %v614_v32 }
 0x18e   :  { %617 = vst [vmem:[#allocation10] sm:$0xff] %v616_v34 }
 0x18f   :  { %935 = shalt.err (!%p932_p8)
}
 0x190   :  { %s936_s5 = scalar_lea.hbm %s1096_s6, 128 }
 0x191   :  { %p937_p9 = scmp.ne.s32.totalorder %s1096_s6, %s936_s5  ;;  %p940_p10 = scmp.lt.u32.totalorder %s936_s5, %s1096_s6 }
 0x193   :  { %p942_p11 = pnand %p940_p10, %p937_p9 }
 0x195   :  { %945 = shalt.err (!%p942_p11)
}
 0x196   :  { %627 = dma.vmem_to_hbm [thread:$0]  %s625_s25, 128, %s1096_s6, [#allocation4]  }
 0x197   :  { %952 = dma.done.wait [#allocation4], 128  }
 0x198   :  { %953 = vsyncadd [#allocation4], 4294967168 }
 0x199   :  { %631 = vsyncpa [#allocation3], 1 }
 0x19a   :  { %632 = vsyncpa [#allocation6], 1 }
 0x19b   :  { %633 = vsyncpa [#allocation9], 1 }
 0x19c   :  { %634 = vsyncpa [#allocation4], 1 }

</bundles_post_ra>
